<compile_context>
chip_gen: v6e
topology: v6e:2x2x1
jax: 0.10.0
libtpu: 0.0.40
codegen_flags: <defaults>
</compile_context>

<pallas_src>
import functools

import jax
import jax.numpy as jnp
from jax import lax
from jax.experimental import pallas as pl
from jax.experimental.pallas import tpu as pltpu


def _round_up(x, m):
    return (x + m - 1) // m * m


def _pad2(r, c):
    """Element count of an (r, c) tile padded to the (8, 128) VMEM layout."""
    return _round_up(max(int(r), 1), 8) * _round_up(max(int(c), 1), 128)


def _vmem_capacity_bytes():
    try:
        cap = int(pltpu.get_tpu_info().vmem_capacity_bytes)
        if cap > 0:
            return cap
    except Exception:
        pass
    return 64 * 1024 * 1024  # conservative default (v7x per-TensorCore VMEM)


def _linear_argmax_kernel(x_ref, w_ref, scores_ref, preds_ref,
                          acc_ref, bestv_ref, besti_ref, *, num_labels):
    j = pl.program_id(1)            # label-tile index
    k = pl.program_id(2)            # contraction-tile index
    nl = pl.num_programs(1)
    nk = pl.num_programs(2)

    @pl.when(k == 0)
    def _():
        acc_ref[...] = jnp.zeros_like(acc_ref)

    # Weight was pre-transposed to (D, Lpad) in the wrapper, so this is the natural
    # (M,K)x(K,N) MXU contraction: no in-kernel relayout/transpose of the weight tile.
    acc_ref[...] += jnp.dot(x_ref[...], w_ref[...],
                            preferred_element_type=jnp.float32)

    @pl.when(k == nk - 1)
    def _():
        scores = acc_ref[...]
        # Lane-dense store; ragged (padded-label) columns are masked on writeback.
        scores_ref[...] = scores.astype(scores_ref.dtype)

        tb, tl = scores.shape
        col = lax.broadcasted_iota(jnp.int32, (tb, tl), dimension=1) + j * tl
        valid = col < num_labels                       # exclude zero-padded label columns
        s = jnp.where(valid, scores, -jnp.inf)
        tile_max = jnp.max(s, axis=1, keepdims=True)
        sentinel = jnp.int32(jnp.iinfo(jnp.int32).max)
        # First-maximal index within this label tile (matches torch.max(dim=1)).
        tile_arg = jnp.min(jnp.where((s == tile_max) & valid, col, sentinel),
                           axis=1, keepdims=True)

        @pl.when(j == 0)
        def _():
            bestv_ref[...] = tile_max
            besti_ref[...] = tile_arg

        @pl.when(j > 0)
        def _():
            # strict > keeps the earlier (lower-index) tile on ties -> first-match overall
            better = tile_max > bestv_ref[...]
            besti_ref[...] = jnp.where(better, tile_arg, besti_ref[...])
            bestv_ref[...] = jnp.maximum(tile_max, bestv_ref[...])

        @pl.when(j == nl - 1)
        def _():
            preds = besti_ref[...].reshape(tb)
            preds_ref[...] = preds.reshape(1, tb)      # lane-dense predictions store


def linear_net_forward(examples, weight, *, input_dtype=None):
    """Pallas TPU implementation of LinearNet.forward -> (scores, predictions).

    examples: (batch, dim), weight: (num_labels, dim)  (nn.Linear(bias=False) layout)
    input_dtype: optionally jnp.bfloat16 to halve HBM traffic on v6e/v7x (the matmul
                 accumulates and the argmax runs in f32). Default keeps f32 parity.
    """
    B, D = examples.shape
    L, Dw = weight.shape
    assert D == Dw and B >= 1 and L >= 1

    in_dtype = jnp.dtype(input_dtype) if input_dtype is not None else examples.dtype
    in_itemsize = in_dtype.itemsize

    # ---- generation-aware VMEM budget (per TensorCore; on v7x the "parallel" batch
    # axis runs on 2 TCs so the resident weight is duplicated per core — the per-core
    # budget already accounts for that). ----
    cap = _vmem_capacity_bytes()
    budget = int(cap * 0.6)

    Lpad = _round_up(L, 128)            # lane-dense label axis
    min_tb = min(B, 128)

    # Weight-resident fast path: whole (D, Lpad) weight fetched once, single-buffered.
    resident = (
        _pad2(D, Lpad) * in_itemsize                # W, single buffer
        + 2 * _pad2(min_tb, D) * in_itemsize        # x double-buffer @ minimal tile
        + 3 * _pad2(min_tb, Lpad) * 4               # scores out (x2) + f32 accumulator
    ) <= budget

    if resident:
        tk, tl, nbuf_w = D, Lpad, 1
    else:
        # Large head: stream the weight with label (L) and contraction (D) tiling
        # plus the online running-max/argmax reduction over label tiles.
        nbuf_w = 2
        tl = 128
        for cand in (512, 256):
            if Lpad % cand == 0:
                tl = cand
                break
        tk = D
        if D > 1024:
            for cand in (1024, 512, 256, 128):
                if D % cand == 0:
                    tk = cand
                    break
            # TODO(synk): for large D with no multiple-of-128 divisor, zero-pad the
            # contraction dim of x and W instead of keeping it unblocked.

    # ---- batch tile: biggest multiple of 128 under the remaining VMEM budget,
    # but keep >= ~8 grid steps (DMA overlap + v7x megacore) when the batch allows. ----
    fixed_bytes = nbuf_w * _pad2(tk, tl) * in_itemsize + (1 << 20)   # W + misc slack
    per_row_bytes = (2 * _round_up(tk, 128) * in_itemsize            # x double buffer
                     + 3 * _round_up(tl, 128) * 4)                   # scores (x2) + acc
    avail = max(budget - fixed_bytes, 0)
    tb_budget = max((avail // per_row_bytes) // 128 * 128, 128)

    if B <= min(tb_budget, 512):
        tb = B                           # single tile; full-dim blocks are always legal
    else:
        tb = min(tb_budget, 2048)
        tb = min(tb, max(256, _round_up(pl.cdiv(B, 8), 128)))
        tb = max(tb, 128)

    nb = pl.cdiv(B, tb)
    nl = Lpad // tl
    nk = D // tk

    # ---- one-time weight prep only; x is NOT copied / padded (ragged blocks). ----
    x = examples if examples.dtype == in_dtype else examples.astype(in_dtype)
    w_t = jnp.transpose(weight).astype(in_dtype)          # (D, L): natural MXU layout
    if Lpad != L:
        w_t = jnp.pad(w_t, ((0, 0), (0, Lpad - L)))        # zero label cols (masked in-kernel)

    # ---- explicit scoped-VMEM limit computed from the real footprint ----
    total_vmem = (2 * _pad2(tb, tk) * in_itemsize          # x (double-buffered)
                  + nbuf_w * _pad2(tk, tl) * in_itemsize   # weight
                  + 2 * _pad2(tb, tl) * 4                  # scores out
                  + 2 * _pad2(1, tb) * 4                   # preds out
                  + _pad2(tb, tl) * 4                      # acc scratch
                  + 2 * _pad2(tb, 1) * 4)                  # running max / argmax scratch
    vmem_limit = int(min(max(total_vmem + (2 << 20), 32 << 20), cap))

    if resident:
        # Constant block index: fetched once, kept resident, no second buffer.
        w_spec = pl.BlockSpec((tk, tl), lambda i, j, k: (0, 0),
                              pipeline_mode=pl.Buffered(1))
    else:
        w_spec = pl.BlockSpec((tk, tl), lambda i, j, k: (k, j))

    cost = pl.CostEstimate(
        flops=2 * B * D * L,
        transcendentals=0,
        bytes_accessed=(in_itemsize * B * D
                        + in_itemsize * D * Lpad * (1 if resident else nb)
                        + 4 * B * L + 4 * B),
    )

    scores, preds_row = pl.pallas_call(
        functools.partial(_linear_argmax_kernel, num_labels=L),
        grid=(nb, nl, nk),
        in_specs=[
            pl.BlockSpec((tb, tk), lambda i, j, k: (i, k)),   # batch x contraction tile of x
            w_spec,
        ],
        out_specs=[
            pl.BlockSpec((tb, tl), lambda i, j, k: (i, j)),   # lane-dense scores tile
            pl.BlockSpec((1, tb), lambda i, j, k: (0, i)),    # lane-dense predictions
        ],
        out_shape=[
            jax.ShapeDtypeStruct((B, L), jnp.float32),        # exact shapes: no pad / slice copies
            jax.ShapeDtypeStruct((1, B), jnp.int32),
        ],
        scratch_shapes=[
            pltpu.VMEM((tb, tl), jnp.float32),                # f32 accumulator
            pltpu.VMEM((tb, 1), jnp.float32),                 # running max value
            pltpu.VMEM((tb, 1), jnp.int32),                   # running argmax
        ],
        compiler_params=pltpu.CompilerParams(
            dimension_semantics=("parallel", "arbitrary", "arbitrary"),
            vmem_limit_bytes=vmem_limit,
        ),
        cost_estimate=cost,
    )(x, w_t)

    return scores, preds_row[0]


if __name__ == "__main__":
    batch, dim, num_labels = 8, 32, 16

    key = jax.random.PRNGKey(0)
    kx, kw = jax.random.split(key)
    # Deterministic inputs (stand-in for nn.Linear's default init)
    examples = jax.random.normal(kx, (batch, dim), dtype=jnp.float32)
    bound = 1.0 / (dim ** 0.5)
    weight = jax.random.uniform(
        kw, (num_labels, dim), dtype=jnp.float32, minval=-bound, maxval=bound
    )

    scores, preds = linear_net_forward(examples, weight)
    jax.block_until_ready((scores, preds))

    # Sanity check against plain-JAX reference
    ref_scores = examples @ weight.T
    ref_preds = jnp.argmax(ref_scores, axis=1).astype(jnp.int32)
    assert scores.shape == (batch, num_labels) and preds.shape == (batch,)
    assert jnp.allclose(scores, ref_scores, atol=1e-5, rtol=1e-5)
    assert jnp.array_equal(preds, ref_preds)

    print("KERNEL_OK")
</pallas_src>

<mosaic_0001>
module attributes {stable_mosaic.version = 11 : i64} {
  func.func @_linear_argmax_kernel(%arg0: i32, %arg1: i32, %arg2: i32, %arg3: memref<8x32xf32, #tpu.memory_space<vmem>>, %arg4: memref<32x128xf32, #tpu.memory_space<vmem>>, %arg5: memref<8x128xf32, #tpu.memory_space<vmem>>, %arg6: memref<1x8xi32, #tpu.memory_space<vmem>>, %arg7: memref<8x128xf32, #tpu.memory_space<vmem>>, %arg8: memref<8x1xf32, #tpu.memory_space<vmem>>, %arg9: memref<8x1xi32, #tpu.memory_space<vmem>>) attributes {dimension_semantics = [#tpu.dimension_semantics<parallel>, #tpu.dimension_semantics<arbitrary>, #tpu.dimension_semantics<arbitrary>], iteration_bounds = array<i64: 1, 1, 1>, scalar_prefetch = 0 : i64, scratch_operands = 3 : i64, tpu.core_type = #tpu.core_type<tc>, window_params = [{transform_indices = @transform_0, window_bounds = array<i64: 8, 32>}, {pipeline_mode = #tpu.pipeline_mode<synchronous>, transform_indices = @transform_1, window_bounds = array<i64: 32, 128>}, {transform_indices = @transform_2, window_bounds = array<i64: 8, 128>}, {transform_indices = @transform_3, window_bounds = array<i64: 1, 8>}]} {
    %c0_i32 = arith.constant 0 : i32
    %0 = arith.cmpi eq, %arg2, %c0_i32 : i32
    %1 = arith.extui %0 : i1 to i32
    %c0_i32_0 = arith.constant 0 : i32
    %2 = arith.cmpi ne, %1, %c0_i32_0 : i32
    scf.if %2 {
      %cst_10 = arith.constant 0.000000e+00 : f32
      %12 = vector.broadcast %cst_10 : f32 to vector<8x128xf32>
      %c0_11 = arith.constant 0 : index
      %c0_12 = arith.constant 0 : index
      %13 = vector.load %arg7[%c0_11, %c0_12] : memref<8x128xf32, #tpu.memory_space<vmem>>, vector<8x128xf32>
      tpu.vector_store %arg7[%c0_11, %c0_12], %12 {strides = array<i32>} : memref<8x128xf32, #tpu.memory_space<vmem>>, vector<8x128xf32>,
    } else {
    }
    %c0 = arith.constant 0 : index
    %c0_1 = arith.constant 0 : index
    %3 = vector.load %arg7[%c0, %c0_1] : memref<8x128xf32, #tpu.memory_space<vmem>>, vector<8x128xf32>
    %c0_2 = arith.constant 0 : index
    %c0_3 = arith.constant 0 : index
    %4 = vector.load %arg3[%c0_2, %c0_3] : memref<8x32xf32, #tpu.memory_space<vmem>>, vector<8x32xf32>
    %c0_4 = arith.constant 0 : index
    %c0_5 = arith.constant 0 : index
    %5 = vector.load %arg4[%c0_4, %c0_5] : memref<32x128xf32, #tpu.memory_space<vmem>>, vector<32x128xf32>
    %cst = arith.constant dense<0.000000e+00> : vector<8x128xf32>
    %6 = tpu.matmul %4, %5, %cst {dimension_numbers = #tpu.dot_dimension_numbers<[1], [0], [0], [1], [0, 0, 1, 1], [], []>} : vector<8x32xf32>, vector<32x128xf32>, vector<8x128xf32> -> vector<8x128xf32>
    %7 = arith.addf %3, %6 : vector<8x128xf32>
    %c0_6 = arith.constant 0 : index
    %c0_7 = arith.constant 0 : index
    %8 = vector.load %arg7[%c0_6, %c0_7] : memref<8x128xf32, #tpu.memory_space<vmem>>, vector<8x128xf32>
    tpu.vector_store %arg7[%c0_6, %c0_7], %7 {strides = array<i32>} : memref<8x128xf32, #tpu.memory_space<vmem>>, vector<8x128xf32>,
    %c0_i32_8 = arith.constant 0 : i32
    %9 = arith.cmpi eq, %arg2, %c0_i32_8 : i32
    %10 = arith.extui %9 : i1 to i32
    %c0_i32_9 = arith.constant 0 : i32
    %11 = arith.cmpi ne, %10, %c0_i32_9 : i32
    scf.if %11 {
      %c0_10 = arith.constant 0 : index
      %c0_11 = arith.constant 0 : index
      %12 = vector.load %arg7[%c0_10, %c0_11] : memref<8x128xf32, #tpu.memory_space<vmem>>, vector<8x128xf32>
      %c0_12 = arith.constant 0 : index
      %c0_13 = arith.constant 0 : index
      %13 = vector.load %arg5[%c0_12, %c0_13] : memref<8x128xf32, #tpu.memory_space<vmem>>, vector<8x128xf32>
      tpu.vector_store %arg5[%c0_12, %c0_13], %12 {strides = array<i32>} : memref<8x128xf32, #tpu.memory_space<vmem>>, vector<8x128xf32>,
      %14 = tpu.iota {dimensions = array<i32: 1>} : vector<8x128xi32>
      %c128_i32 = arith.constant 128 : i32
      %15 = arith.muli %arg1, %c128_i32 : i32
      %16 = vector.broadcast %15 : i32 to vector<8x128xi32>
      %17 = arith.addi %14, %16 : vector<8x128xi32>
      %c16_i32 = arith.constant 16 : i32
      %18 = vector.broadcast %c16_i32 : i32 to vector<8x128xi32>
      %19 = arith.cmpi slt, %17, %18 : vector<8x128xi32>
      %cst_14 = arith.constant 0xFF800000 : f32
      %20 = vector.broadcast %cst_14 : f32 to vector<8x128xf32>
      %21 = arith.select %19, %12, %20 : vector<8x128xi1>, vector<8x128xf32>
      %cst_15 = arith.constant dense<0xFF800000> : vector<8xf32>
      %22 = vector.multi_reduction <maximumf>, %21, %cst_15 [1] : vector<8x128xf32> to vector<8xf32>
      %23 = vector.shape_cast %22 : vector<8xf32> to vector<8x1xf32>
      %24 = vector.broadcast %23 : vector<8x1xf32> to vector<8x128xf32>
      %25 = arith.cmpf oeq, %21, %24 : vector<8x128xf32>
      %26 = arith.andi %25, %19 : vector<8x128xi1>
      %c2147483647_i32 = arith.constant 2147483647 : i32
      %27 = vector.broadcast %c2147483647_i32 : i32 to vector<8x128xi32>
      %28 = arith.select %26, %17, %27 : vector<8x128xi1>, vector<8x128xi32>
      %cst_16 = arith.constant dense<2147483647> : vector<8xi32>
      %29 = vector.multi_reduction <minsi>, %28, %cst_16 [1] : vector<8x128xi32> to vector<8xi32>
      %30 = vector.shape_cast %29 : vector<8xi32> to vector<8x1xi32>
      %c0_i32_17 = arith.constant 0 : i32
      %31 = arith.cmpi eq, %arg1, %c0_i32_17 : i32
      %32 = arith.extui %31 : i1 to i32
      %c0_i32_18 = arith.constant 0 : i32
      %33 = arith.cmpi ne, %32, %c0_i32_18 : i32
      scf.if %33 {
        %c0_23 = arith.constant 0 : index
        %c0_24 = arith.constant 0 : index
        %40 = vector.load %arg8[%c0_23, %c0_24] : memref<8x1xf32, #tpu.memory_space<vmem>>, vector<8x1xf32>
        tpu.vector_store %arg8[%c0_23, %c0_24], %23 {strides = array<i32>} : memref<8x1xf32, #tpu.memory_space<vmem>>, vector<8x1xf32>,
        %c0_25 = arith.constant 0 : index
        %c0_26 = arith.constant 0 : index
        %41 = vector.load %arg9[%c0_25, %c0_26] : memref<8x1xi32, #tpu.memory_space<vmem>>, vector<8x1xi32>
        tpu.vector_store %arg9[%c0_25, %c0_26], %30 {strides = array<i32>} : memref<8x1xi32, #tpu.memory_space<vmem>>, vector<8x1xi32>,
      } else {
      }
      %c0_i32_19 = arith.constant 0 : i32
      %34 = arith.cmpi sgt, %arg1, %c0_i32_19 : i32
      %35 = arith.extui %34 : i1 to i32
      %c0_i32_20 = arith.constant 0 : i32
      %36 = arith.cmpi ne, %35, %c0_i32_20 : i32
      scf.if %36 {
        %c0_23 = arith.constant 0 : index
        %c0_24 = arith.constant 0 : index
        %40 = vector.load %arg8[%c0_23, %c0_24] : memref<8x1xf32, #tpu.memory_space<vmem>>, vector<8x1xf32>
        %41 = arith.cmpf ogt, %23, %40 : vector<8x1xf32>
        %c0_25 = arith.constant 0 : index
        %c0_26 = arith.constant 0 : index
        %42 = vector.load %arg9[%c0_25, %c0_26] : memref<8x1xi32, #tpu.memory_space<vmem>>, vector<8x1xi32>
        %43 = arith.select %41, %30, %42 : vector<8x1xi1>, vector<8x1xi32>
        %c0_27 = arith.constant 0 : index
        %c0_28 = arith.constant 0 : index
        %44 = vector.load %arg9[%c0_27, %c0_28] : memref<8x1xi32, #tpu.memory_space<vmem>>, vector<8x1xi32>
        tpu.vector_store %arg9[%c0_27, %c0_28], %43 {strides = array<i32>} : memref<8x1xi32, #tpu.memory_space<vmem>>, vector<8x1xi32>,
        %c0_29 = arith.constant 0 : index
        %c0_30 = arith.constant 0 : index
        %45 = vector.load %arg8[%c0_29, %c0_30] : memref<8x1xf32, #tpu.memory_space<vmem>>, vector<8x1xf32>
        %46 = arith.maximumf %23, %45 : vector<8x1xf32>
        %c0_31 = arith.constant 0 : index
        %c0_32 = arith.constant 0 : index
        %47 = vector.load %arg8[%c0_31, %c0_32] : memref<8x1xf32, #tpu.memory_space<vmem>>, vector<8x1xf32>
        tpu.vector_store %arg8[%c0_31, %c0_32], %46 {strides = array<i32>} : memref<8x1xf32, #tpu.memory_space<vmem>>, vector<8x1xf32>,
      } else {
      }
      %c0_i32_21 = arith.constant 0 : i32
      %37 = arith.cmpi eq, %arg1, %c0_i32_21 : i32
      %38 = arith.extui %37 : i1 to i32
      %c0_i32_22 = arith.constant 0 : i32
      %39 = arith.cmpi ne, %38, %c0_i32_22 : i32
      scf.if %39 {
        %c0_23 = arith.constant 0 : index
        %c0_24 = arith.constant 0 : index
        %40 = vector.load %arg9[%c0_23, %c0_24] : memref<8x1xi32, #tpu.memory_space<vmem>>, vector<8x1xi32>
        %41 = vector.shape_cast %40 : vector<8x1xi32> to vector<8xi32>
        %42 = vector.shape_cast %41 : vector<8xi32> to vector<1x8xi32>
        %c0_25 = arith.constant 0 : index
        %c0_26 = arith.constant 0 : index
        %43 = vector.load %arg6[%c0_25, %c0_26] : memref<1x8xi32, #tpu.memory_space<vmem>>, vector<1x8xi32>
        tpu.vector_store %arg6[%c0_25, %c0_26], %42 {strides = array<i32>} : memref<1x8xi32, #tpu.memory_space<vmem>>, vector<1x8xi32>,
      } else {
      }
    } else {
    }
    return
  }
  func.func @transform_0(%arg0: i32, %arg1: i32, %arg2: i32) -> (i32, i32) {
    %c0_i32 = arith.constant 0 : i32
    return %arg0, %arg2 : i32, i32
  }
  func.func @transform_1(%arg0: i32, %arg1: i32, %arg2: i32) -> (i32, i32) {
    %c0_i32 = arith.constant 0 : i32
    %c0_i32_0 = arith.constant 0 : i32
    %c0_i32_1 = arith.constant 0 : i32
    return %c0_i32, %c0_i32_0 : i32, i32
  }
  func.func @transform_2(%arg0: i32, %arg1: i32, %arg2: i32) -> (i32, i32) {
    %c0_i32 = arith.constant 0 : i32
    return %arg0, %arg1 : i32, i32
  }
  func.func @transform_3(%arg0: i32, %arg1: i32, %arg2: i32) -> (i32, i32) {
    %c0_i32 = arith.constant 0 : i32
    %c0_i32_0 = arith.constant 0 : i32
    return %c0_i32, %arg0 : i32, i32
  }
}

</mosaic_0001>

<bundles_post_ra>
// kernel: tpu_custom_call.1
= control target key start
LH: loop header
LB: loop body
LE: loop exit
PB: predicated region body
PF: predicated region fallthrough
CT: control target
= control target key end

     0   :  { %9 = vsyncpa [#allocation6], 0  ;;  %s380_s0 = inlined_call_operand.hbm [shape: f32[8,32], index: 0, kind: input, shape index: {}]   ;;  %s381_s1 = inlined_call_operand.hbm [shape: f32[32,128], index: 1, kind: input, shape index: {}]   ;;  %s382_s2 = inlined_call_operand.hbm [shape: f32[8,16], index: 2, kind: output, shape index: {0}]   ;;  %s383_s3 = inlined_call_operand.hbm [shape: s32[1,8], index: 3, kind: output, shape index: {1}]  }
   0x1   :  { %10 = vsyncpa [#allocation9], 0 }
   0x2   :  { %11 = vsyncpa [#allocation7], 0 }
   0x3   :  { %12 = vsyncpa [#allocation12], 0  ;;  %s338_s12 = smov [#allocation5]   ;;  %s339_s14 = smov [#allocation8]  }
   0x4   :  { %s19_s13 = sshll.u32 %s338_s12, 4  ;;  %s28_s15 = sshll.u32 %s339_s14, 4  ;;  %s20_s13 = int_to_ptr.vmem [resolvable:$true] %s19_s13  ;;  %s29_s15 = int_to_ptr.vmem [resolvable:$true] %s28_s15 }
   0x5   :  { %s258_s16 = scalar_lea.vmem %s20_s13, 128  ;;  %p263_p1 = scmp.lt.s32.totalorder %s20_s13, %s20_s13 }
   0x6   :  { %p259_p0 = scmp.ne.s32.totalorder %s20_s13, %s258_s16  ;;  %p264_p2 = scmp.lt.s32.totalorder %s258_s16, %s258_s16 }
   0x8   :  { %p265_p3 = por %p264_p2, %p263_p1 }
   0xa   :  { %p266_p4 = pnand %p265_p3, %p259_p0 }
   0xc   :  { %269 = shalt.err (!%p266_p4)
}
   0xd   :  { %22 = dma.hbm_to_vmem [thread:$0]  %s380_s0, 128, %s20_s13, [#allocation6]  }
   0xe   :  { %s278_s19 = scalar_lea.vmem %s29_s15, 512  ;;  %p283_p6 = scmp.lt.s32.totalorder %s29_s15, %s29_s15 }
   0xf   :  { %p279_p5 = scmp.ne.s32.totalorder %s29_s15, %s278_s19  ;;  %p284_p7 = scmp.lt.s32.totalorder %s278_s19, %s278_s19 }
  0x11   :  { %p285_p8 = por %p284_p7, %p283_p6 }
  0x13   :  { %p286_p9 = pnand %p285_p8, %p279_p5 }
  0x15   :  { %289 = shalt.err (!%p286_p9)
}
  0x16   :  { %s340_s20 = smov 128   ;;  %s341_s21 = smov 8  }
  0x17   :  { %34 = dma.hbm_to_vmem [thread:$0]  %s381_s1, 512, %s29_s15, [#allocation9], %s340_s20, %s340_s20, %s341_s21  }
  0x18   :  { %330 = dma.done.wait [#allocation6], 128  }
  0x19   :  { %331 = vsyncadd [#allocation6], 4294967168 }
  0x1a   :  { %332 = dma.done.wait [#allocation9], 512  }
  0x1b   :  { %333 = vsyncadd [#allocation9], 4294966784  ;;  %v342_v0 = vmov 0.0   ;;  %vm343_vm0 = vmmov 0   ;;  %v51_v1 = vld [vmem:[#allocation8 + $0x18] sm:$0xff]  ;;  %v50_v2 = vld [vmem:[#allocation8 + $0x10] sm:$0xff]  ;;  %v133_v6 = vlaneseq }
  0x1c   :  { %228 = vmatprep.subr.mxu0 %v342_v0  ;;  %236 = vmatprep.mubr.msk.f32.mxu0 %vm343_vm0, %v342_v0  ;;  %v49_v3 = vld [vmem:[#allocation8 + $0x8] sm:$0xff]  ;;  %v48_v4 = vld [vmem:[#allocation8] sm:$0xff]  ;;  %v47_v5 = vld [vmem:[#allocation5] sm:$0xff]  ;;  %vm52_vm1 = vcmask 261120   ;;  %vm163_vm3 = vcmask 7168   ;;  %v344_v19 = vmov 0  }
  0x1d   :  { %229 = vmatpush3.msra.mxu0 %v51_v1  ;;  %v134_v7 = vand.u32 127, %v133_v6  ;;  %248 = vset.pattern.permute.xlu1 %v344_v19  ;;  %s345_s0 = smov [#allocation10]  }
  0x1e   :  { %230 = vmatprep.subr.mxu0 %v342_v0  ;;  %249 = vset.pattern.permute.xlu0 %v344_v19  ;;  %s198_s1 = sshll.u32 %s345_s0, 4  ;;  %s199_s1 = int_to_ptr.vmem [resolvable:$true] %s198_s1 }
  0x1f   :  { %231 = vmatpush3.msra.mxu0 %v50_v2  ;;  %vm138_vm2 = vcmp.lt.s32.totalorder %v134_v7, 16  ;;  %s290_s24 = scalar_lea.vmem %s199_s1, 128  ;;  %p295_p11 = scmp.lt.s32.totalorder %s199_s1, %s199_s1 }
  0x20   :  { %232 = vmatprep.subr.mxu0 %v342_v0  ;;  %p291_p10 = scmp.ne.s32.totalorder %s199_s1, %s290_s24  ;;  %p296_p12 = scmp.lt.s32.totalorder %s290_s24, %s290_s24 }
  0x21   :  { %233 = vmatpush3.msra.mxu0 %v49_v3 }
  0x22   :  { %234 = vmatprep.subr.mxu0 %v342_v0  ;;  %p297_p13 = por %p296_p12, %p295_p11 }
  0x23   :  { %235 = vmatpush3.msra.mxu0 %v48_v4 }
  0x24   :  { %237 = vmatmul.mubr.msk.f32.vlgmr.msra.gmra.mxu0 %vm52_vm1, %v47_v5  ;;  %p298_p0 = pnand %p297_p13, %p291_p10 }
  0xe4   :  { %v122_v8 = vpop.f32.mrf.mxu0 }
  0xe5   :  { %132 = vst [vmem:[#allocation10] sm:$0xff] %v122_v8  ;;  %v139_v9 = vsel %vm138_vm2, %v122_v8, -inf }
  0xe6   :  { %140 = vmax.xlane.f32.xlu0 %v139_v9  ;;  %v238_v10 = vpop.f32.mrf.mxu0 }
 0x16f   :  { %v141_v11 = vpop.xlane.xlu0 %140 }
 0x170   :  { %vm142_vm4 = vcmp.eq.f32.partialorder %v139_v9, %v141_v11 }
 0x171   :  { %vm143_vm5 = vmand %vm142_vm4, %vm138_vm2 }
 0x172   :  { %v144_v12 = vsel %vm143_vm5, %v134_v7, 2147483647 }
 0x173   :  { %v146_v13 = vshra.s32 %v144_v12, 16  ;;  %v145_v15 = vand.u32 65535, %v144_v12 }
 0x175   :  { %v148_v14 = vcvt.s32.f32 %v146_v13  ;;  %v147_v17 = vcvt.s32.f32 %v145_v15 }
 0x177   :  { %149 = vmin.xlane.f32.xlu0 %v148_v14 }
 0x200   :  { %v150_v16 = vpop.xlane.xlu0 %149 }
 0x201   :  { %vm151_vm6 = vcmp.eq.f32.partialorder %v148_v14, %v150_v16  ;;  %v156_v20 = vcvt.f32.s32 %v150_v16 }
 0x202   :  { %v152_v18 = vsel %vm151_vm6, %v147_v17, inf }
 0x203   :  { %153 = vmin.xlane.f32.xlu1 %v152_v18  ;;  %v157_v22 = vshll.u32 %v156_v20, 16 }
 0x28c   :  { %v154_v21 = vpop.xlane.xlu1 %153 }
 0x28d   :  { %v155_v23 = vcvt.f32.s32 %v154_v21 }
 0x28f   :  { %v158_v24 = vadd.s32 %v157_v22, %v155_v23 }
 0x291   :  { %165 = vst.msk [vmem:[#allocation4] sm:$0xff] %vm163_vm3, %v158_v24 }
 0x298   :  { %v182_v25 = vld [vmem:[#allocation4] sm:$0xff] }
 0x299   :  { %301 = shalt.err (!%p298_p0)
}
 0x29a   :  { %201 = dma.vmem_to_hbm [thread:$0]  %s199_s1, 128, %s382_s2, [#allocation7]   ;;  %184 = vperm.xlu1 %248, %v182_v25   ;;  %v187_v26 = vshrl.u32 %v133_v6, 7  ;;  %vm190_vm7 = vcmask 57344  }
 0x29b   :  { %s346_s27 = smov [#allocation11]  }
 0x29c   :  { %v188_v27 = vsub.s32 %v134_v7, %v187_v26  ;;  %s208_s28 = sshll.u32 %s346_s27, 4  ;;  %s209_s28 = int_to_ptr.vmem [resolvable:$true] %s208_s28 }
 0x29d   :  { %s310_s29 = scalar_lea.vmem %s209_s28, 16  ;;  %s314_s30 = scalar_lea.vmem %s209_s28, 32 }
 0x29e   :  { %p311_p1 = scmp.ne.s32.totalorder %s209_s28, %s310_s29  ;;  %p315_p2 = scmp.lt.s32.totalorder %s209_s28, %s209_s28 }
 0x29f   :  { %p316_p3 = scmp.lt.s32.totalorder %s314_s30, %s310_s29 }
 0x2a1   :  { %p317_p4 = por %p316_p3, %p315_p2 }
 0x2a3   :  { %p318_p5 = pnand %p317_p4, %p311_p1 }
 0x315   :  { %v185_v28 = vpop.permute.xlu1 %184 }
 0x316   :  { %v189_v29 = vrot.slane %v185_v28, %v188_v27 }
 0x318   :  { %191 = vst.msk [vmem:[#allocation11] sm:$0x1] %vm190_vm7, %v189_v29 }
 0x319   :  { %321 = shalt.err (!%p318_p5)
}
 0x31a   :  { %211 = dma.vmem_to_hbm [thread:$0]  %s209_s28, 16, %s383_s3, [#allocation12]  }
 0x31b   :  { %334 = dma.done.wait [#allocation7], 128  }
 0x31c   :  { %335 = vsyncadd [#allocation7], 4294967168 }
 0x31d   :  { %336 = dma.done.wait [#allocation12], 16  }
 0x31e   :  { %337 = vsyncadd [#allocation12], 4294967280 }
 0x31f   :  { %218 = vsyncpa [#allocation6], 1 }
 0x320   :  { %219 = vsyncpa [#allocation9], 1 }
 0x321   :  { %220 = vsyncpa [#allocation7], 1 }
 0x322   :  { %221 = vsyncpa [#allocation12], 1 }

</bundles_post_ra>
